<compile_context>
chip_gen: v6e
topology: v6e:2x2x1
jax: 0.10.0
libtpu: 0.0.40
codegen_flags: <defaults>
</compile_context>

<pallas_src>
import jax
import jax.numpy as jnp
from jax.experimental import pallas as pl
from jax.experimental.pallas import tpu as pltpu

TAU = 0.2
ALPHA_NEG = 0.8
ALPHA_POS = 0.0
EPS = 1e-8           # eps used in the loss (matches module self.eps)
COS_EPS = 1e-8       # eps used by F.cosine_similarity

_LANE = 128
_DEFAULT_MAX_TILE = 512          # VMEM-safe on v5e/v6e/v7x at D=32
_VMEM_LIMIT = 32 * 1024 * 1024


def _round_up(x, m):
    return (x + m - 1) // m * m


def _pick_tile(n_pad, max_tile=_DEFAULT_MAX_TILE):
    """Largest 128-multiple tile <= max_tile dividing n_pad, preferring >= 2
    row tiles so the 'parallel' grid axis can use both v7x TensorCores."""
    cands = [t for t in (512, 384, 256, 128) if t <= max_tile and n_pad % t == 0]
    for t in cands:
        if n_pad // t >= 2:
            return t
    return cands[0] if cands else _LANE


def _prenormalize(x_pad, tau):
    """Row-normalize and fold in 1/sqrt(tau) once, outside the grid.

    Zero (padded) rows stay exactly zero, so any dot against them is exactly
    0 and exp(0) == 1 -- which the glue subtracts per padded column."""
    sq = jnp.sum(x_pad * x_pad, axis=-1, keepdims=True)
    inv = jax.lax.rsqrt(jnp.maximum(sq, COS_EPS)) * ((1.0 / tau) ** 0.5)
    return x_pad * inv


# ----------------------------------------------------------------------------
# Kernel bodies
# ----------------------------------------------------------------------------

def _hcl_negsum_kernel(xa_ref, xb_ref, neg_ref):
    """Accumulate per-row sums of exp(sim/tau) (no N^2 writeback, no mask DMA).

    xa_ref: (T, D) pre-normalized rows of tile i   -> LANE axis of the tile
    xb_ref: (T, D) pre-normalized rows of tile j   -> SUBLANE axis of the tile
    The (T, T) tile e[c, r] = exp_sim[i*T+r, j*T+c]; summing over the sublane
    axis (c) yields a lane-dense (1, T) partial row-sum which accumulates
    directly into the VMEM-resident (1, 1, T) output block across j.
    The diagonal (eye mask) is subtracted only on i == j tiles.
    """
    i = pl.program_id(0)
    j = pl.program_id(1)

    @pl.when(j == 0)
    def _():
        neg_ref[...] = jnp.zeros_like(neg_ref)

    s = jax.lax.dot_general(
        xb_ref[...], xa_ref[...],
        dimension_numbers=(((1,), (1,)), ((), ())),
        preferred_element_type=jnp.float32)                   # (T, T)
    e = jnp.exp(s)

    neg_ref[...] += jnp.sum(e, axis=0, keepdims=True)[None]   # (1, 1, T)

    @pl.when(i == j)
    def _():
        t = e.shape[0]
        sub_ix = jax.lax.broadcasted_iota(jnp.int32, (t, t), 0)
        lane_ix = jax.lax.broadcasted_iota(jnp.int32, (t, t), 1)
        diag = jnp.sum(jnp.where(sub_ix == lane_ix, e, 0.0),
                       axis=0, keepdims=True)                  # (1, T)
        neg_ref[...] -= diag[None]


def _hcl_exp_rows_kernel(xr_ref, xc_ref, out_ref):
    """exp(sim/tau) for the gathered pair rows only (should_filter=True path)."""
    s = jax.lax.dot_general(
        xr_ref[...], xc_ref[...],
        dimension_numbers=(((1,), (1,)), ((), ())),
        preferred_element_type=jnp.float32)
    out_ref[...] = jnp.exp(s)


# ----------------------------------------------------------------------------
# pallas_call wrappers
# ----------------------------------------------------------------------------

def _run_negsum_kernel(xhat_pad, tile):
    n_pad, d = xhat_pad.shape
    n_tiles = n_pad // tile
    cost = pl.CostEstimate(
        flops=int(2 * n_pad * n_pad * d + 3 * n_pad * n_pad),
        transcendentals=int(n_pad * n_pad),
        bytes_accessed=int(8 * d * n_pad * n_tiles + 4 * n_pad))
    neg = pl.pallas_call(
        _hcl_negsum_kernel,
        out_shape=jax.ShapeDtypeStruct((n_tiles, 1, tile), jnp.float32),
        grid=(n_tiles, n_tiles),
        in_specs=[
            pl.BlockSpec((tile, d), lambda i, j: (i, 0)),      # rows (lane axis)
            pl.BlockSpec((tile, d), lambda i, j: (j, 0)),      # cols (sublane axis)
        ],
        # Lane-dense (1, 1, T) output block, VMEM-resident across the j sweep.
        out_specs=pl.BlockSpec((1, 1, tile), lambda i, j: (i, 0, 0)),
        compiler_params=pltpu.CompilerParams(
            dimension_semantics=("parallel", "arbitrary"),
            vmem_limit_bytes=_VMEM_LIMIT),
        cost_estimate=cost,
    )(xhat_pad, xhat_pad)
    return neg.reshape(-1)                                      # (n_pad,)


def _run_exp_rows_kernel(xr_pad, xhat_pad, tile_r, tile_c):
    r_pad, d = xr_pad.shape
    n_pad, _ = xhat_pad.shape
    cost = pl.CostEstimate(
        flops=int(2 * r_pad * n_pad * d),
        transcendentals=int(r_pad * n_pad),
        bytes_accessed=int(4 * (r_pad * d * (n_pad // tile_c)
                                + n_pad * d * (r_pad // tile_r)
                                + r_pad * n_pad)))
    return pl.pallas_call(
        _hcl_exp_rows_kernel,
        out_shape=jax.ShapeDtypeStruct((r_pad, n_pad), jnp.float32),
        grid=(r_pad // tile_r, n_pad // tile_c),
        in_specs=[
            pl.BlockSpec((tile_r, d), lambda i, j: (i, 0)),
            pl.BlockSpec((tile_c, d), lambda i, j: (j, 0)),
        ],
        out_specs=pl.BlockSpec((tile_r, tile_c), lambda i, j: (i, j)),
        compiler_params=pltpu.CompilerParams(
            dimension_semantics=("parallel", "parallel"),
            vmem_limit_bytes=_VMEM_LIMIT),
        cost_estimate=cost,
    )(xr_pad, xhat_pad)


# ----------------------------------------------------------------------------
# Loss (glue)
# ----------------------------------------------------------------------------

def hcl_loss(embeddings, positive_pairs, should_filter=False,
             tau=TAU, alpha_neg=ALPHA_NEG, alpha_pos=ALPHA_POS, eps=EPS,
             max_tile=_DEFAULT_MAX_TILE):
    """JAX/Pallas equivalent of HCL.forward(embeddings, positive_pairs, should_filter)."""
    embeddings = embeddings.astype(jnp.float32)
    N, D = embeddings.shape
    num_pairs = positive_pairs.shape[0]
    idx_i = positive_pairs[:, 0].astype(jnp.int32)
    idx_j = positive_pairs[:, 1].astype(jnp.int32)

    n_pad = _round_up(N, _LANE)
    tile = _pick_tile(n_pad, max_tile)
    x_pad = jnp.pad(embeddings, ((0, n_pad - N), (0, 0)))
    xhat = _prenormalize(x_pad, tau)                 # (n_pad, D), padded rows == 0

    # exp(sim/tau) at the positive pairs (symmetric), from the 2P gathered
    # pre-normalized rows: O(P*D) glue, no dense gather.
    pos = jnp.exp(jnp.sum(xhat[idx_i] * xhat[idx_j], axis=-1))   # (P,)

    if should_filter:
        # Hard-mining branch: compute only the 2P exp_sim rows actually needed.
        rows = jnp.concatenate([idx_i, idx_j])                   # (2P,) global rows
        R = 2 * num_pairs
        r_pad = _round_up(R, _LANE)
        rows_pad = jnp.pad(rows, (0, r_pad - R))
        xr = xhat[rows_pad]                                      # (r_pad, D)
        exp_rows = _run_exp_rows_kernel(xr, xhat, _LANE, tile)[:R, :N]   # (2P, N)

        # Per-GLOBAL-row masked columns (eye + both pair directions), applied to
        # every gathered copy of that row — matches masking the dense matrix
        # before gathering (a row repeated across pairs gets all its masks).
        uniq = jnp.unique(rows, size=R, fill_value=N)            # sorted
        entry_rows = jnp.concatenate([rows, rows])               # pairs + diagonal
        entry_cols = jnp.concatenate(
            [jnp.concatenate([idx_j, idx_i]), rows])
        u = jnp.searchsorted(uniq, entry_rows)
        colmask = jnp.zeros((R, N), jnp.bool_).at[u, entry_cols].set(True)
        mask_rows = colmask[jnp.searchsorted(uniq, rows)]        # (2P, N)

        neg_rows = jnp.where(mask_rows, 0.0, exp_rows)
        neg_i = neg_rows[:num_pairs]                              # (P, N)
        neg_j = neg_rows[num_pairs:]                              # (P, N)
        pos_ij = exp_rows[jnp.arange(num_pairs), idx_j]
        pos_ji = exp_rows[num_pairs + jnp.arange(num_pairs), idx_i]

        # TODO(synk): torch.quantile (sorting-based) has no clean Pallas
        # equivalent; the quantile hard-mining thresholds are computed in XLA.
        thr_neg_i = jnp.quantile(neg_i, alpha_neg, axis=1, keepdims=True)
        thr_neg_j = jnp.quantile(neg_j, alpha_neg, axis=1, keepdims=True)
        hard_i = jnp.where(neg_i >= thr_neg_i, neg_i, 0.0)
        hard_j = jnp.where(neg_j >= thr_neg_j, neg_j, 0.0)
        sum_hard_i = hard_i.sum(axis=1)
        sum_hard_j = hard_j.sum(axis=1)
        thr_pos_i = jnp.quantile(pos_ij, 1.0 - alpha_pos)
        thr_pos_j = jnp.quantile(pos_ji, 1.0 - alpha_pos)
        pos_ij_f = jnp.where(pos_ij <= thr_pos_i, pos_ij, 0.0)
        pos_ji_f = jnp.where(pos_ji <= thr_pos_j, pos_ji, 0.0)
        loss_ij = -jnp.log((pos_ij_f + eps) / (pos_ij_f + sum_hard_i + eps))
        loss_ji = -jnp.log((pos_ji_f + eps) / (pos_ji_f + sum_hard_j + eps))
    else:
        # Default path: kernel emits only lane-dense per-row sums (no mask DMA,
        # no N^2 writeback).  Diagonal already removed in-kernel.
        row_sum = _run_negsum_kernel(xhat, tile)[:N]
        # Padded columns: each zero column contributes exp(0) == 1 exactly.
        row_sum = row_sum - float(n_pad - N)
        # Subtract positive-pair entries (both directions), deduplicated so a
        # repeated pair is only removed once (the boolean mask is idempotent).
        er = jnp.concatenate([idx_i, idx_j])
        ec = jnp.concatenate([idx_j, idx_i])
        vals = jnp.concatenate([pos, pos])
        order = jnp.lexsort((ec, er))
        er_s, ec_s, v_s = er[order], ec[order], vals[order]
        first = jnp.concatenate(
            [jnp.array([True]),
             (er_s[1:] != er_s[:-1]) | (ec_s[1:] != ec_s[:-1])])
        keep = first & (er_s != ec_s)            # diagonal already removed in-kernel
        sub = jnp.zeros((N,), jnp.float32).at[er_s].add(jnp.where(keep, v_s, 0.0))
        neg_row_sum = row_sum - sub

        sum_neg_i = neg_row_sum[idx_i]
        sum_neg_j = neg_row_sum[idx_j]
        loss_ij = -jnp.log(pos / (pos + sum_neg_i))
        loss_ji = -jnp.log(pos / (pos + sum_neg_j))

    contrastive_loss = (loss_ij + loss_ji).sum()
    return contrastive_loss / (2.0 * num_pairs)


# ----------------------------------------------------------------------------
# Pure-JAX references (mirror the PyTorch module)
# ----------------------------------------------------------------------------

def _reference_loss(embeddings, positive_pairs):
    x = embeddings.astype(jnp.float32)
    norm = jnp.sqrt(jnp.sum(x * x, axis=-1, keepdims=True))
    sim = (x @ x.T) / jnp.maximum(norm * norm.T, COS_EPS)
    N = x.shape[0]
    idx_i = positive_pairs[:, 0]
    idx_j = positive_pairs[:, 1]
    mask = jnp.eye(N, dtype=jnp.bool_)
    mask = mask.at[idx_i, idx_j].set(True)
    mask = mask.at[idx_j, idx_i].set(True)
    exp_sim = jnp.exp(sim / TAU)
    exp_sim_masked = jnp.where(mask, 0.0, exp_sim)
    pos_ij = exp_sim[idx_i, idx_j]
    pos_ji = exp_sim[idx_j, idx_i]
    sum_i = exp_sim_masked[idx_i].sum(axis=1)
    sum_j = exp_sim_masked[idx_j].sum(axis=1)
    loss_ij = -jnp.log(pos_ij / (pos_ij + sum_i))
    loss_ji = -jnp.log(pos_ji / (pos_ji + sum_j))
    return (loss_ij + loss_ji).sum() / (2.0 * positive_pairs.shape[0])


def _reference_loss_filtered(embeddings, positive_pairs,
                             tau=TAU, alpha_neg=ALPHA_NEG, alpha_pos=ALPHA_POS,
                             eps=EPS):
    x = embeddings.astype(jnp.float32)
    norm = jnp.sqrt(jnp.sum(x * x, axis=-1, keepdims=True))
    sim = (x @ x.T) / jnp.maximum(norm * norm.T, COS_EPS)
    N = x.shape[0]
    idx_i = positive_pairs[:, 0]
    idx_j = positive_pairs[:, 1]
    mask = jnp.eye(N, dtype=jnp.bool_)
    mask = mask.at[idx_i, idx_j].set(True)
    mask = mask.at[idx_j, idx_i].set(True)
    exp_sim = jnp.exp(sim / tau)
    exp_m = jnp.where(mask, 0.0, exp_sim)
    pos_ij = exp_sim[idx_i, idx_j]
    pos_ji = exp_sim[idx_j, idx_i]
    neg_i = exp_m[idx_i]
    neg_j = exp_m[idx_j]
    thr_i = jnp.quantile(neg_i, alpha_neg, axis=1, keepdims=True)
    thr_j = jnp.quantile(neg_j, alpha_neg, axis=1, keepdims=True)
    hard_i = jnp.where(neg_i >= thr_i, neg_i, 0.0)
    hard_j = jnp.where(neg_j >= thr_j, neg_j, 0.0)
    si = hard_i.sum(axis=1)
    sj = hard_j.sum(axis=1)
    tp_i = jnp.quantile(pos_ij, 1.0 - alpha_pos)
    tp_j = jnp.quantile(pos_ji, 1.0 - alpha_pos)
    p_i = jnp.where(pos_ij <= tp_i, pos_ij, 0.0)
    p_j = jnp.where(pos_ji <= tp_j, pos_ji, 0.0)
    loss_ij = -jnp.log((p_i + eps) / (p_i + si + eps))
    loss_ji = -jnp.log((p_j + eps) / (p_j + sj + eps))
    return (loss_ij + loss_ji).sum() / (2.0 * positive_pairs.shape[0])


if __name__ == "__main__":
    key = jax.random.PRNGKey(0)

    # --- Test 1: tiny shapes (N=16 pads to a single 128 tile) -----------------
    N, D, P = 16, 32, 8
    k1, k2 = jax.random.split(key)
    embeddings = jax.random.normal(k1, (N, D), dtype=jnp.float32)
    positive_pairs = jnp.stack(
        [jnp.arange(0, 2 * P, 2, dtype=jnp.int32),
         jnp.arange(1, 2 * P, 2, dtype=jnp.int32)], axis=1)

    loss = jax.block_until_ready(
        hcl_loss(embeddings, positive_pairs, should_filter=False))
    ref = jax.block_until_ready(_reference_loss(embeddings, positive_pairs))
    assert jnp.allclose(loss, ref, rtol=1e-3, atol=1e-4), (loss, ref)

    loss_f = jax.block_until_ready(
        hcl_loss(embeddings, positive_pairs, should_filter=True))
    ref_f = jax.block_until_ready(
        _reference_loss_filtered(embeddings, positive_pairs))
    assert jnp.isfinite(loss_f)
    assert jnp.allclose(loss_f, ref_f, rtol=2e-3, atol=1e-3), (loss_f, ref_f)

    # --- Test 2: multi-tile grid (N=300 pads to 384 -> 3x3 grid of 128 tiles),
    #             with repeated indices AND an exact duplicate pair ------------
    N2, D2 = 300, 32
    emb2 = jax.random.normal(k2, (N2, D2), dtype=jnp.float32)
    ii = jnp.concatenate(
        [jnp.arange(0, 60, 2, dtype=jnp.int32), jnp.array([0, 3, 0], jnp.int32)])
    jj = jnp.concatenate(
        [jnp.arange(1, 60, 2, dtype=jnp.int32), jnp.array([7, 0, 1], jnp.int32)])
    pairs2 = jnp.stack([ii, jj], axis=1)

    loss2 = jax.block_until_ready(hcl_loss(emb2, pairs2, should_filter=False))
    ref2 = jax.block_until_ready(_reference_loss(emb2, pairs2))
    assert jnp.allclose(loss2, ref2, rtol=1e-3, atol=1e-4), (loss2, ref2)

    loss2_f = jax.block_until_ready(hcl_loss(emb2, pairs2, should_filter=True))
    ref2_f = jax.block_until_ready(_reference_loss_filtered(emb2, pairs2))
    assert jnp.allclose(loss2_f, ref2_f, rtol=2e-3, atol=1e-3), (loss2_f, ref2_f)

    print("KERNEL_OK")
</pallas_src>

<mosaic_0001>
module attributes {stable_mosaic.version = 11 : i64} {
  func.func @_hcl_negsum_kernel(%arg0: i32, %arg1: i32, %arg2: memref<128x32xf32, #tpu.memory_space<vmem>>, %arg3: memref<128x32xf32, #tpu.memory_space<vmem>>, %arg4: memref<1x1x128xf32, #tpu.memory_space<vmem>>) attributes {dimension_semantics = [#tpu.dimension_semantics<parallel>, #tpu.dimension_semantics<arbitrary>], iteration_bounds = array<i64: 1, 1>, scalar_prefetch = 0 : i64, scratch_operands = 0 : i64, tpu.core_type = #tpu.core_type<tc>, window_params = [{transform_indices = @transform_0, window_bounds = array<i64: 128, 32>}, {transform_indices = @transform_1, window_bounds = array<i64: 128, 32>}, {transform_indices = @transform_2, window_bounds = array<i64: 1, 1, 128>}]} {
    %c0_i32 = arith.constant 0 : i32
    %0 = arith.cmpi eq, %arg1, %c0_i32 : i32
    %1 = arith.extui %0 : i1 to i32
    %c0_i32_0 = arith.constant 0 : i32
    %2 = arith.cmpi ne, %1, %c0_i32_0 : i32
    scf.if %2 {
      %cst_12 = arith.constant 0.000000e+00 : f32
      %16 = vector.broadcast %cst_12 : f32 to vector<1x1x128xf32>
      %c0_13 = arith.constant 0 : index
      %c0_14 = arith.constant 0 : index
      %c0_15 = arith.constant 0 : index
      %17 = vector.load %arg4[%c0_13, %c0_14, %c0_15] : memref<1x1x128xf32, #tpu.memory_space<vmem>>, vector<1x1x128xf32>
      tpu.vector_store %arg4[%c0_13, %c0_14, %c0_15], %16 {strides = array<i32>} : memref<1x1x128xf32, #tpu.memory_space<vmem>>, vector<1x1x128xf32>,
    } else {
    }
    %c0 = arith.constant 0 : index
    %c0_1 = arith.constant 0 : index
    %3 = vector.load %arg3[%c0, %c0_1] : memref<128x32xf32, #tpu.memory_space<vmem>>, vector<128x32xf32>
    %c0_2 = arith.constant 0 : index
    %c0_3 = arith.constant 0 : index
    %4 = vector.load %arg2[%c0_2, %c0_3] : memref<128x32xf32, #tpu.memory_space<vmem>>, vector<128x32xf32>
    %cst = arith.constant dense<0.000000e+00> : vector<128x128xf32>
    %5 = tpu.matmul %3, %4, %cst {dimension_numbers = #tpu.dot_dimension_numbers<[1], [1], [0], [0], [0, 0, 1, 0], [], []>} : vector<128x32xf32>, vector<128x32xf32>, vector<128x128xf32> -> vector<128x128xf32>
    %6 = math.exp %5 : vector<128x128xf32>
    %c0_4 = arith.constant 0 : index
    %c0_5 = arith.constant 0 : index
    %c0_6 = arith.constant 0 : index
    %7 = vector.load %arg4[%c0_4, %c0_5, %c0_6] : memref<1x1x128xf32, #tpu.memory_space<vmem>>, vector<1x1x128xf32>
    %cst_7 = arith.constant dense<0.000000e+00> : vector<128xf32>
    %8 = vector.multi_reduction <add>, %6, %cst_7 [0] : vector<128x128xf32> to vector<128xf32>
    %9 = vector.shape_cast %8 : vector<128xf32> to vector<1x128xf32>
    %10 = vector.shape_cast %9 : vector<1x128xf32> to vector<1x1x128xf32>
    %11 = arith.addf %7, %10 : vector<1x1x128xf32>
    %c0_8 = arith.constant 0 : index
    %c0_9 = arith.constant 0 : index
    %c0_10 = arith.constant 0 : index
    %12 = vector.load %arg4[%c0_8, %c0_9, %c0_10] : memref<1x1x128xf32, #tpu.memory_space<vmem>>, vector<1x1x128xf32>
    tpu.vector_store %arg4[%c0_8, %c0_9, %c0_10], %11 {strides = array<i32>} : memref<1x1x128xf32, #tpu.memory_space<vmem>>, vector<1x1x128xf32>,
    %13 = arith.cmpi eq, %arg0, %arg1 : i32
    %14 = arith.extui %13 : i1 to i32
    %c0_i32_11 = arith.constant 0 : i32
    %15 = arith.cmpi ne, %14, %c0_i32_11 : i32
    scf.if %15 {
      %16 = tpu.iota {dimensions = array<i32: 0>} : vector<128x128xi32>
      %17 = tpu.iota {dimensions = array<i32: 1>} : vector<128x128xi32>
      %18 = arith.cmpi eq, %16, %17 : vector<128x128xi32>
      %cst_12 = arith.constant 0.000000e+00 : f32
      %19 = vector.broadcast %cst_12 : f32 to vector<128x128xf32>
      %20 = arith.select %18, %6, %19 : vector<128x128xi1>, vector<128x128xf32>
      %cst_13 = arith.constant dense<0.000000e+00> : vector<128xf32>
      %21 = vector.multi_reduction <add>, %20, %cst_13 [0] : vector<128x128xf32> to vector<128xf32>
      %22 = vector.shape_cast %21 : vector<128xf32> to vector<1x128xf32>
      %c0_14 = arith.constant 0 : index
      %c0_15 = arith.constant 0 : index
      %c0_16 = arith.constant 0 : index
      %23 = vector.load %arg4[%c0_14, %c0_15, %c0_16] : memref<1x1x128xf32, #tpu.memory_space<vmem>>, vector<1x1x128xf32>
      %24 = vector.shape_cast %22 : vector<1x128xf32> to vector<1x1x128xf32>
      %25 = arith.subf %23, %24 : vector<1x1x128xf32>
      %c0_17 = arith.constant 0 : index
      %c0_18 = arith.constant 0 : index
      %c0_19 = arith.constant 0 : index
      %26 = vector.load %arg4[%c0_17, %c0_18, %c0_19] : memref<1x1x128xf32, #tpu.memory_space<vmem>>, vector<1x1x128xf32>
      tpu.vector_store %arg4[%c0_17, %c0_18, %c0_19], %25 {strides = array<i32>} : memref<1x1x128xf32, #tpu.memory_space<vmem>>, vector<1x1x128xf32>,
    } else {
    }
    return
  }
  func.func @transform_0(%arg0: i32, %arg1: i32) -> (i32, i32) {
    %c0_i32 = arith.constant 0 : i32
    %c0_i32_0 = arith.constant 0 : i32
    return %arg0, %c0_i32 : i32, i32
  }
  func.func @transform_1(%arg0: i32, %arg1: i32) -> (i32, i32) {
    %c0_i32 = arith.constant 0 : i32
    %c0_i32_0 = arith.constant 0 : i32
    return %arg1, %c0_i32 : i32, i32
  }
  func.func @transform_2(%arg0: i32, %arg1: i32) -> (i32, i32, i32) {
    %c0_i32 = arith.constant 0 : i32
    %c0_i32_0 = arith.constant 0 : i32
    %c0_i32_1 = arith.constant 0 : i32
    return %arg0, %c0_i32, %c0_i32_0 : i32, i32, i32
  }
}

</mosaic_0001>

<bundles_post_ra>
// kernel: tpu_custom_call.1
= control target key start
LH: loop header
LB: loop body
LE: loop exit
PB: predicated region body
PF: predicated region fallthrough
CT: control target
= control target key end

     0   :  { %vm49_vm0 = vcmask 261120   ;;  %s880_s0 = inlined_call_operand.vmem [shape: f32[128,32], index: 0, kind: input, shape index: {}]   ;;  %s881_s1 = inlined_call_operand.vmem [shape: f32[128,32], index: 1, kind: input, shape index: {}]   ;;  %s882_s2 = inlined_call_operand.hbm [shape: f32[1,1,128], index: 2, kind: output, shape index: {}]  }
   0x1   :  { %v48_v0 = vld [vmem:[%s880_s0 + $0x78] sm:$0xff]  ;;  %v47_v1 = vld [vmem:[%s880_s0 + $0x70] sm:$0xff]  ;;  %v46_v2 = vld [vmem:[%s880_s0 + $0x68] sm:$0xff] }
   0x2   :  { %504 = vmatprep.subr.msk.mxu0 %vm49_vm0, %v48_v0  ;;  %560 = vmatprep.subr.msk.mxu1 %vm49_vm0, %v48_v0  ;;  %v17_v3 = vld [vmem:[%s881_s1] sm:$0xff] }
   0x3   :  { %505 = vmatpush3.xpose.msk.msra.mxu0 %vm49_vm0, %v48_v0  ;;  %576 = vmatpush3.xpose.msk.msra.mxu1 %vm49_vm0, %v48_v0  ;;  %v45_v4 = vld [vmem:[%s880_s0 + $0x60] sm:$0xff] }
   0x4   :  { %506 = vmatprep.subr.msk.mxu0 %vm49_vm0, %v47_v1  ;;  %561 = vmatprep.subr.msk.mxu1 %vm49_vm0, %v47_v1  ;;  %v25_v5 = vld [vmem:[%s881_s1 + $0x40] sm:$0xff] }
   0x5   :  { %536 = vmatprep.mubr.msk.f32.mxu0 %vm49_vm0, %v17_v3  ;;  %548 = vmatprep.mubr.msk.f32.mxu1 %vm49_vm0, %v25_v5 }
   0x7   :  { %507 = vmatpush3.xpose.msk.msra.mxu0 %vm49_vm0, %v47_v1  ;;  %577 = vmatpush3.xpose.msk.msra.mxu1 %vm49_vm0, %v47_v1 }
   0x8   :  { %508 = vmatprep.subr.msk.mxu0 %vm49_vm0, %v46_v2  ;;  %562 = vmatprep.subr.msk.mxu1 %vm49_vm0, %v46_v2 }
   0xb   :  { %509 = vmatpush3.xpose.msk.msra.mxu0 %vm49_vm0, %v46_v2  ;;  %578 = vmatpush3.xpose.msk.msra.mxu1 %vm49_vm0, %v46_v2 }
   0xc   :  { %7 = vsyncpa [#allocation3], 0  ;;  %510 = vmatprep.subr.msk.mxu0 %vm49_vm0, %v45_v4  ;;  %563 = vmatprep.subr.msk.mxu1 %vm49_vm0, %v45_v4  ;;  %v44_v6 = vld [vmem:[%s880_s0 + $0x58] sm:$0xff]  ;;  %v43_v7 = vld [vmem:[%s880_s0 + $0x50] sm:$0xff]  ;;  %v648_v32 = vmov 0.0   ;;  %v351_v42 = vlaneseq }
   0xd   :  { %v42_v8 = vld [vmem:[%s880_s0 + $0x48] sm:$0xff]  ;;  %v41_v9 = vld [vmem:[%s880_s0 + $0x40] sm:$0xff]  ;;  %v40_v10 = vld [vmem:[%s880_s0 + $0x38] sm:$0xff]  ;;  %16 = vst [vmem:[#allocation2] sm:$0x1] %v648_v32 }
   0xe   :  { %v39_v11 = vld [vmem:[%s880_s0 + $0x30] sm:$0xff]  ;;  %v38_v12 = vld [vmem:[%s880_s0 + $0x28] sm:$0xff]  ;;  %v37_v13 = vld [vmem:[%s880_s0 + $0x20] sm:$0xff]  ;;  %v841_v48 = vshrl.u32 %v351_v42, 7  ;;  %v844_v55 = vand.u32 127, %v351_v42 }
   0xf   :  { %511 = vmatpush3.xpose.msk.msra.mxu0 %vm49_vm0, %v45_v4  ;;  %579 = vmatpush3.xpose.msk.msra.mxu1 %vm49_vm0, %v45_v4  ;;  %v36_v14 = vld [vmem:[%s880_s0 + $0x18] sm:$0xff]  ;;  %v35_v15 = vld [vmem:[%s880_s0 + $0x10] sm:$0xff]  ;;  %v34_v16 = vld [vmem:[%s880_s0 + $0x8] sm:$0xff] }
  0x10   :  { %512 = vmatprep.subr.msk.mxu0 %vm49_vm0, %v44_v6  ;;  %564 = vmatprep.subr.msk.mxu1 %vm49_vm0, %v44_v6  ;;  %v33_v17 = vld [vmem:[%s880_s0] sm:$0xff]  ;;  %v18_v18 = vld [vmem:[%s881_s1 + $0x8] sm:$0xff]  ;;  %v19_v20 = vld [vmem:[%s881_s1 + $0x10] sm:$0xff]  ;;  %v353_v54 = vadd.s32 8, %v841_v48  ;;  %vm370_vm1 = vcmp.eq.s32.totalorder %v841_v48, %v844_v55  ;;  %v354_v59 = vadd.s32 16, %v841_v48  ;;  %v355_v0 = vadd.s32 24, %v841_v48 }
  0x11   :  { %v26_v19 = vld [vmem:[%s881_s1 + $0x48] sm:$0xff]  ;;  %v27_v21 = vld [vmem:[%s881_s1 + $0x50] sm:$0xff]  ;;  %v20_v22 = vld [vmem:[%s881_s1 + $0x18] sm:$0xff]  ;;  %v356_v3 = vadd.s32 32, %v841_v48 }
  0x12   :  { %v28_v23 = vld [vmem:[%s881_s1 + $0x58] sm:$0xff]  ;;  %v21_v24 = vld [vmem:[%s881_s1 + $0x20] sm:$0xff]  ;;  %v22_v26 = vld [vmem:[%s881_s1 + $0x28] sm:$0xff]  ;;  %vm371_vm2 = vcmp.eq.s32.totalorder %v353_v54, %v844_v55  ;;  %vm372_vm3 = vcmp.eq.s32.totalorder %v354_v59, %v844_v55  ;;  %vm373_vm4 = vcmp.eq.s32.totalorder %v355_v0, %v844_v55 }
  0x13   :  { %513 = vmatpush3.xpose.msk.msra.mxu0 %vm49_vm0, %v44_v6  ;;  %580 = vmatpush3.xpose.msk.msra.mxu1 %vm49_vm0, %v44_v6  ;;  %v29_v25 = vld [vmem:[%s881_s1 + $0x60] sm:$0xff]  ;;  %v30_v27 = vld [vmem:[%s881_s1 + $0x68] sm:$0xff]  ;;  %v23_v28 = vld [vmem:[%s881_s1 + $0x30] sm:$0xff]  ;;  %vm374_vm5 = vcmp.eq.s32.totalorder %v356_v3, %v844_v55 }
  0x14   :  { %514 = vmatprep.subr.msk.mxu0 %vm49_vm0, %v43_v7  ;;  %565 = vmatprep.subr.msk.mxu1 %vm49_vm0, %v43_v7  ;;  %v31_v29 = vld [vmem:[%s881_s1 + $0x70] sm:$0xff]  ;;  %v24_v30 = vld [vmem:[%s881_s1 + $0x38] sm:$0xff] }
  0x15   :  { %v32_v31 = vld [vmem:[%s881_s1 + $0x78] sm:$0xff]  ;;  %s649_s1 = smov [#allocation2]  }
  0x16   :  { %s432_s16 = sshll.u32 %s649_s1, 4  ;;  %s433_s16 = int_to_ptr.vmem [resolvable:$true] %s432_s16 }
  0x17   :  { %515 = vmatpush3.xpose.msk.msra.mxu0 %vm49_vm0, %v43_v7  ;;  %581 = vmatpush3.xpose.msk.msra.mxu1 %vm49_vm0, %v43_v7  ;;  %s626_s17 = scalar_lea.vmem %s433_s16, 16  ;;  %s630_s18 = scalar_lea.vmem %s433_s16, 32 }
  0x18   :  { %516 = vmatprep.subr.msk.mxu0 %vm49_vm0, %v42_v8  ;;  %566 = vmatprep.subr.msk.mxu1 %vm49_vm0, %v42_v8  ;;  %p627_p0 = scmp.ne.s32.totalorder %s433_s16, %s626_s17  ;;  %p631_p1 = scmp.lt.s32.totalorder %s433_s16, %s433_s16 }
  0x19   :  { %p632_p2 = scmp.lt.s32.totalorder %s630_s18, %s626_s17 }
  0x1b   :  { %517 = vmatpush3.xpose.msk.msra.mxu0 %vm49_vm0, %v42_v8  ;;  %582 = vmatpush3.xpose.msk.msra.mxu1 %vm49_vm0, %v42_v8  ;;  %p633_p3 = por %p632_p2, %p631_p1 }
  0x1c   :  { %518 = vmatprep.subr.msk.mxu0 %vm49_vm0, %v41_v9  ;;  %567 = vmatprep.subr.msk.mxu1 %vm49_vm0, %v41_v9 }
  0x1d   :  { %p634_p4 = pnand %p633_p3, %p627_p0 }
  0x1f   :  { %519 = vmatpush3.xpose.msk.msra.mxu0 %vm49_vm0, %v41_v9  ;;  %583 = vmatpush3.xpose.msk.msra.mxu1 %vm49_vm0, %v41_v9 }
  0x20   :  { %520 = vmatprep.subr.msk.mxu0 %vm49_vm0, %v40_v10  ;;  %568 = vmatprep.subr.msk.mxu1 %vm49_vm0, %v40_v10 }
  0x23   :  { %521 = vmatpush3.xpose.msk.msra.mxu0 %vm49_vm0, %v40_v10  ;;  %584 = vmatpush3.xpose.msk.msra.mxu1 %vm49_vm0, %v40_v10 }
  0x24   :  { %522 = vmatprep.subr.msk.mxu0 %vm49_vm0, %v39_v11  ;;  %569 = vmatprep.subr.msk.mxu1 %vm49_vm0, %v39_v11 }
  0x27   :  { %523 = vmatpush3.xpose.msk.msra.mxu0 %vm49_vm0, %v39_v11  ;;  %585 = vmatpush3.xpose.msk.msra.mxu1 %vm49_vm0, %v39_v11  ;;  %v357_v11 = vadd.s32 40, %v841_v48 }
  0x28   :  { %524 = vmatprep.subr.msk.mxu0 %vm49_vm0, %v38_v12  ;;  %570 = vmatprep.subr.msk.mxu1 %vm49_vm0, %v38_v12 }
  0x29   :  { %vm375_vm6 = vcmp.eq.s32.totalorder %v357_v11, %v844_v55 }
  0x2b   :  { %525 = vmatpush3.xpose.msk.msra.mxu0 %vm49_vm0, %v38_v12  ;;  %586 = vmatpush3.xpose.msk.msra.mxu1 %vm49_vm0, %v38_v12 }
  0x2c   :  { %526 = vmatprep.subr.msk.mxu0 %vm49_vm0, %v37_v13  ;;  %571 = vmatprep.subr.msk.mxu1 %vm49_vm0, %v37_v13 }
  0x2f   :  { %527 = vmatpush3.xpose.msk.msra.mxu0 %vm49_vm0, %v37_v13  ;;  %587 = vmatpush3.xpose.msk.msra.mxu1 %vm49_vm0, %v37_v13 }
  0x30   :  { %528 = vmatprep.subr.msk.mxu0 %vm49_vm0, %v36_v14  ;;  %572 = vmatprep.subr.msk.mxu1 %vm49_vm0, %v36_v14 }
  0x33   :  { %529 = vmatpush3.xpose.msk.msra.mxu0 %vm49_vm0, %v36_v14  ;;  %588 = vmatpush3.xpose.msk.msra.mxu1 %vm49_vm0, %v36_v14 }
  0x34   :  { %530 = vmatprep.subr.msk.mxu0 %vm49_vm0, %v35_v15  ;;  %573 = vmatprep.subr.msk.mxu1 %vm49_vm0, %v35_v15 }
  0x37   :  { %531 = vmatpush3.xpose.msk.msra.mxu0 %vm49_vm0, %v35_v15  ;;  %589 = vmatpush3.xpose.msk.msra.mxu1 %vm49_vm0, %v35_v15 }
  0x38   :  { %532 = vmatprep.subr.msk.mxu0 %vm49_vm0, %v34_v16  ;;  %574 = vmatprep.subr.msk.mxu1 %vm49_vm0, %v34_v16 }
  0x3b   :  { %533 = vmatpush3.xpose.msk.msra.mxu0 %vm49_vm0, %v34_v16  ;;  %590 = vmatpush3.xpose.msk.msra.mxu1 %vm49_vm0, %v34_v16  ;;  %v358_v16 = vadd.s32 48, %v841_v48 }
  0x3c   :  { %534 = vmatprep.subr.msk.mxu0 %vm49_vm0, %v33_v17  ;;  %575 = vmatprep.subr.msk.mxu1 %vm49_vm0, %v33_v17 }
  0x3d   :  { %vm376_vm7 = vcmp.eq.s32.totalorder %v358_v16, %v844_v55 }
  0x3f   :  { %535 = vmatpush3.xpose.msk.msra.mxu0 %vm49_vm0, %v33_v17  ;;  %591 = vmatpush3.xpose.msk.msra.mxu1 %vm49_vm0, %v33_v17 }
  0x42   :  { %537 = vmatmul.mubr.msk.f32.vlgmr.msra.gmra.mxu0 %vm49_vm0, %v18_v18  ;;  %549 = vmatmul.mubr.msk.f32.vlgmr.msra.gmra.mxu1 %vm49_vm0, %v26_v19 }
  0x43   :  { %539 = vmatprep.mubr.msk.f32.mxu0 %vm49_vm0, %v19_v20  ;;  %551 = vmatprep.mubr.msk.f32.mxu1 %vm49_vm0, %v27_v21 }
  0x46   :  { %540 = vmatmul.mubr.msk.f32.gmra.mxu0 %vm49_vm0, %v20_v22  ;;  %552 = vmatmul.mubr.msk.f32.gmra.mxu1 %vm49_vm0, %v28_v23 }
  0x47   :  { %542 = vmatprep.mubr.msk.f32.mxu0 %vm49_vm0, %v21_v24  ;;  %554 = vmatprep.mubr.msk.f32.mxu1 %vm49_vm0, %v29_v25  ;;  %v359_v24 = vadd.s32 56, %v841_v48 }
  0x49   :  { %vm377_vm8 = vcmp.eq.s32.totalorder %v359_v24, %v844_v55 }
  0x4a   :  { %543 = vmatmul.mubr.msk.f32.gmra.mxu0 %vm49_vm0, %v22_v26  ;;  %555 = vmatmul.mubr.msk.f32.gmra.mxu1 %vm49_vm0, %v30_v27 }
  0x4b   :  { %545 = vmatprep.mubr.msk.f32.mxu0 %vm49_vm0, %v23_v28  ;;  %557 = vmatprep.mubr.msk.f32.mxu1 %vm49_vm0, %v31_v29  ;;  %v360_v29 = vadd.s32 64, %v841_v48 }
  0x4d   :  { %vm378_vm9 = vcmp.eq.s32.totalorder %v360_v29, %v844_v55 }
  0x4e   :  { %546 = vmatmul.mubr.msk.f32.gmra.mxu0 %vm49_vm0, %v24_v30  ;;  %558 = vmatmul.mubr.msk.f32.gmra.mxu1 %vm49_vm0, %v32_v31 }
 0x102   :  { %v538_v33 = vpop.f32.mrf.mxu0  ;;  %v550_v34 = vpop.f32.mrf.mxu1 }
 0x103   :  { %v293_v35 = vmul.f32 1.442695, %v538_v33  ;;  %v309_v62 = vmul.f32 1.442695, %v550_v34 }
 0x104   :  { %v212_v36 = vpop.f32.mrf.mxu0  ;;  %v252_v37 = vpop.f32.mrf.mxu1 }
 0x105   :  { %v291_v38 = vmul.f32 1.442695, %v212_v36  ;;  %594 = vpow2.f32 %v293_v35  ;;  %v307_v58 = vmul.f32 1.442695, %v252_v37  ;;  %v361_v36 = vadd.s32 72, %v841_v48 }
 0x106   :  { %v541_v39 = vpop.f32.mrf.mxu0  ;;  %v553_v40 = vpop.f32.mrf.mxu1 }
 0x107   :  { %596 = vpow2.f32 %v291_v38  ;;  %v297_v41 = vmul.f32 1.442695, %v541_v39  ;;  %v313_v8 = vmul.f32 1.442695, %v553_v40  ;;  %vm379_vm10 = vcmp.eq.s32.totalorder %v361_v36, %v844_v55 }
 0x108   :  { %v222_v43 = vpop.f32.mrf.mxu0  ;;  %v262_v46 = vpop.f32.mrf.mxu1 }
 0x109   :  { %v295_v44 = vmul.f32 1.442695, %v222_v43  ;;  %598 = vpow2.f32 %v297_v41  ;;  %v311_v2 = vmul.f32 1.442695, %v262_v46  ;;  %v362_v41 = vadd.s32 80, %v841_v48 }
 0x10a   :  { %v544_v45 = vpop.f32.mrf.mxu0  ;;  %v556_v52 = vpop.f32.mrf.mxu1  ;;  %v363_v46 = vadd.s32 88, %v841_v48 }
 0x10b   :  { %600 = vpow2.f32 %v295_v44  ;;  %v301_v47 = vmul.f32 1.442695, %v544_v45  ;;  %v317_v21 = vmul.f32 1.442695, %v556_v52  ;;  %vm380_vm11 = vcmp.eq.s32.totalorder %v362_v41, %v844_v55 }
 0x10c   :  { %v232_v49 = vpop.f32.mrf.mxu0  ;;  %v272_v60 = vpop.f32.mrf.mxu1  ;;  %v364_v52 = vadd.s32 96, %v841_v48  ;;  %vm381_vm12 = vcmp.eq.s32.totalorder %v363_v46, %v844_v55 }
 0x10d   :  { %v299_v50 = vmul.f32 1.442695, %v232_v49  ;;  %602 = vpow2.f32 %v301_v47  ;;  %v315_v14 = vmul.f32 1.442695, %v272_v60 }
 0x10e   :  { %v547_v51 = vpop.f32.mrf.mxu0  ;;  %v559_v4 = vpop.f32.mrf.mxu1  ;;  %vm382_vm13 = vcmp.eq.s32.totalorder %v364_v52, %v844_v55 }
 0x10f   :  { %604 = vpow2.f32 %v299_v50  ;;  %v305_v53 = vmul.f32 1.442695, %v547_v51  ;;  %v321_v33 = vmul.f32 1.442695, %v559_v4  ;;  %v367_v4 = vadd.s32 120, %v841_v48 }
 0x110   :  { %v242_v56 = vpop.f32.mrf.mxu0  ;;  %v282_v17 = vpop.f32.mrf.mxu1 }
 0x111   :  { %v303_v57 = vmul.f32 1.442695, %v242_v56  ;;  %606 = vpow2.f32 %v305_v53  ;;  %v319_v27 = vmul.f32 1.442695, %v282_v17  ;;  %vm385_vm0 = vcmp.eq.s32.totalorder %v367_v4, %v844_v55 }
 0x112   :  { %v595_v61 = vpop.eup %594 }
 0x113   :  { %608 = vpow2.f32 %v303_v57  ;;  %v387_v6 = vsel %vm371_vm2, %v595_v61, 0.0 }
 0x114   :  { %v597_v63 = vpop.eup %596  ;;  %610 = vpow2.f32 %v307_v58  ;;  %v365_v58 = vadd.s32 104, %v841_v48 }
 0x115   :  { %v386_v1 = vsel %vm370_vm1, %v597_v63, 0.0  ;;  %v324_v7 = vadd.f32 %v597_v63, %v595_v61  ;;  %612 = vpow2.f32 %v309_v62  ;;  %v366_v63 = vadd.s32 112, %v841_v48 }
 0x116   :  { %v599_v5 = vpop.eup %598  ;;  %v402_v10 = vadd.f32 %v387_v6, %v386_v1  ;;  %614 = vpow2.f32 %v311_v2  ;;  %vm383_vm14 = vcmp.eq.s32.totalorder %v365_v58, %v844_v55 }
 0x117   :  { %v389_v19 = vsel %vm373_vm4, %v599_v5, 0.0  ;;  %616 = vpow2.f32 %v313_v8  ;;  %vm384_vm15 = vcmp.eq.s32.totalorder %v366_v63, %v844_v55 }
 0x118   :  { %v601_v9 = vpop.eup %600  ;;  %618 = vpow2.f32 %v315_v14 }
 0x119   :  { %v325_v12 = vadd.f32 %v601_v9, %v324_v7  ;;  %v388_v13 = vsel %vm372_vm3, %v601_v9, 0.0  ;;  %620 = vpow2.f32 %v317_v21 }
 0x11a   :  { %v403_v15 = vadd.f32 %v402_v10, %v388_v13  ;;  %v603_v18 = vpop.eup %602  ;;  %622 = vpow2.f32 %v319_v27 }
 0x11b   :  { %v326_v20 = vadd.f32 %v599_v5, %v325_v12  ;;  %v391_v31 = vsel %vm375_vm6, %v603_v18, 0.0  ;;  %624 = vpow2.f32 %v321_v33 }
 0x11c   :  { %v605_v22 = vpop.eup %604  ;;  %v404_v23 = vadd.f32 %v403_v15, %v389_v19 }
 0x11d   :  { %v327_v25 = vadd.f32 %v605_v22, %v326_v20  ;;  %v390_v26 = vsel %vm374_vm5, %v605_v22, 0.0 }
 0x11e   :  { %v405_v28 = vadd.f32 %v404_v23, %v390_v26  ;;  %v607_v30 = vpop.eup %606  ;;  %v323_v26 = vld [vmem:[#allocation2] sm:$0x1] }
 0x11f   :  { %v328_v32 = vadd.f32 %v603_v18, %v327_v25  ;;  %v393_v42 = vsel %vm377_vm8, %v607_v30, 0.0 }
 0x120   :  { %v609_v34 = vpop.eup %608  ;;  %v406_v35 = vadd.f32 %v405_v28, %v391_v31 }
 0x121   :  { %v329_v37 = vadd.f32 %v609_v34, %v328_v32  ;;  %v392_v38 = vsel %vm376_vm7, %v609_v34, 0.0  ;;  %v611_v39 = vpop.eup %610 }
 0x122   :  { %v407_v40 = vadd.f32 %v406_v35, %v392_v38  ;;  %v613_v44 = vpop.eup %612  ;;  %v394_v49 = vsel %vm378_vm9, %v611_v39, 0.0 }
 0x123   :  { %v330_v43 = vadd.f32 %v607_v30, %v329_v37  ;;  %v615_v50 = vpop.eup %614  ;;  %v395_v53 = vsel %vm379_vm10, %v613_v44, 0.0 }
 0x124   :  { %v408_v45 = vadd.f32 %v407_v40, %v393_v42  ;;  %v617_v56 = vpop.eup %616  ;;  %v396_v60 = vsel %vm380_vm11, %v615_v50, 0.0 }
 0x125   :  { %v331_v47 = vadd.f32 %v611_v39, %v330_v43  ;;  %v619_v61 = vpop.eup %618  ;;  %v397_v0 = vsel %vm381_vm12, %v617_v56, 0.0 }
 0x126   :  { %v409_v51 = vadd.f32 %v408_v45, %v394_v49  ;;  %v621_v2 = vpop.eup %620  ;;  %v398_v6 = vsel %vm382_vm13, %v619_v61, 0.0 }
 0x127   :  { %v332_v54 = vadd.f32 %v613_v44, %v331_v47  ;;  %v623_v7 = vpop.eup %622  ;;  %v399_v9 = vsel %vm383_vm14, %v621_v2, 0.0 }
 0x128   :  { %v410_v57 = vadd.f32 %v409_v51, %v395_v53  ;;  %v625_v11 = vpop.eup %624  ;;  %v400_v14 = vsel %vm384_vm15, %v623_v7, 0.0 }
 0x129   :  { %v333_v59 = vadd.f32 %v615_v50, %v332_v54  ;;  %v401_v16 = vsel %vm385_vm0, %v625_v11, 0.0 }
 0x12a   :  { %v411_v62 = vadd.f32 %v410_v57, %v396_v60 }
 0x12b   :  { %v334_v1 = vadd.f32 %v617_v56, %v333_v59 }
 0x12c   :  { %v412_v3 = vadd.f32 %v411_v62, %v397_v0 }
 0x12d   :  { %v335_v5 = vadd.f32 %v619_v61, %v334_v1 }
 0x12e   :  { %v413_v8 = vadd.f32 %v412_v3, %v398_v6 }
 0x12f   :  { %v336_v10 = vadd.f32 %v621_v2, %v335_v5 }
 0x130   :  { %v414_v12 = vadd.f32 %v413_v8, %v399_v9 }
 0x131   :  { %v337_v13 = vadd.f32 %v623_v7, %v336_v10 }
 0x132   :  { %v415_v15 = vadd.f32 %v414_v12, %v400_v14 }
 0x133   :  { %v338_v17 = vadd.f32 %v625_v11, %v337_v13 }
 0x134   :  { %v416_v18 = vadd.f32 %v415_v15, %v401_v16 }
 0x135   :  { %v339_v19 = vrot.slane %v338_v17, 4 }
 0x136   :  { %v417_v48 = vrot.slane %v416_v18, 4 }
 0x137   :  { %v340_v20 = vadd.f32 %v339_v19, %v338_v17 }
 0x138   :  { %v418_v22 = vadd.f32 %v417_v48, %v416_v18 }
 0x139   :  { %v341_v21 = vrot.slane %v340_v20, 2 }
 0x13a   :  { %v419_v25 = vrot.slane %v418_v22, 2 }
 0x13b   :  { %v342_v23 = vadd.f32 %v341_v21, %v340_v20 }
 0x13c   :  { %v420_v29 = vadd.f32 %v419_v25, %v418_v22 }
 0x13d   :  { %v343_v24 = vrot.slane %v342_v23, 1 }
 0x13e   :  { %v421_v55 = vrot.slane %v420_v29, 1 }
 0x13f   :  { %v344_v27 = vadd.f32 %v343_v24, %v342_v23 }
 0x140   :  { %v422_v30 = vadd.f32 %v421_v55, %v420_v29 }
 0x141   :  { %v345_v28 = vadd.f32 %v344_v27, %v323_v26 }
 0x143   :  { %346 = vst [vmem:[#allocation2] sm:$0x1] %v345_v28 }
 0x14a   :  { %v423_v31 = vld [vmem:[#allocation2] sm:$0x1] }
 0x14b   :  { %v424_v32 = vsub.f32 %v423_v31, %v422_v30 }
 0x14d   :  { %425 = vst [vmem:[#allocation2] sm:$0x1] %v424_v32 }
 0x14e   :  { %637 = shalt.err (!%p634_p4)
}
 0x14f   :  { %435 = dma.vmem_to_hbm [thread:$0]  %s433_s16, 16, %s882_s2, [#allocation3]  }
 0x150   :  { %646 = dma.done.wait [#allocation3], 16  }
 0x151   :  { %647 = vsyncadd [#allocation3], 4294967280 }
 0x152   :  { %439 = vsyncpa [#allocation3], 1 }

</bundles_post_ra>
